<compile_context>
chip_gen: v5e
topology: v5e:2x2
jax: 0.10.0
libtpu: 0.0.40
codegen_flags: <defaults>
</compile_context>

<pallas_src>
import functools

import jax
import jax.numpy as jnp
from jax.experimental import pallas as pl
from jax.experimental.pallas import tpu as pltpu


def _clone_kernel(x_ref, w1_ref, b1_ref, w2_ref, b2_ref, wh_ref, bh_ref,
                  out_ref, *, out_size):
    x = x_ref[...]

    # fc1 + ReLU
    h1 = jnp.dot(x, w1_ref[...], preferred_element_type=jnp.float32) + b1_ref[...]
    h1 = jnp.maximum(h1, 0.0)

    # fc2 + ReLU
    h2 = jnp.dot(h1, w2_ref[...], preferred_element_type=jnp.float32) + b2_ref[...]
    h2 = jnp.maximum(h2, 0.0)

    # Fused mean|std head: one matmul producing (tile_b, 2*out_size) logits.
    logits = jnp.dot(h2, wh_ref[...], preferred_element_type=jnp.float32) + bh_ref[...]

    # Lane-masked select: sigmoid on the first `out_size` lanes (mean),
    # clamp(-20, 2) + exp on the remaining lanes (std). Computing both paths
    # over full vregs avoids sub-lane slice/concat copies; EUP work is cheap.
    mean = jax.nn.sigmoid(logits)
    std = jnp.exp(jnp.clip(logits, -20.0, 2.0))
    lane = jax.lax.broadcasted_iota(jnp.int32, logits.shape, dimension=1)
    out_ref[...] = jnp.where(lane < out_size, mean, std)


def clone_model_forward(x, params, *, tile_b=512):
    """x: (B, input_size) float32. params: dict of weights/biases.

    Returns (mean, std), each (B, output_size) float32.
    """
    B, in_size = x.shape
    hidden = params["w1"].shape[1]
    out_size = params["wm"].shape[1]
    n_out = 2 * out_size

    # Fuse the two heads into a single weight / bias (wrapper-side, once).
    head_w = jnp.concatenate([params["wm"], params["ws"]], axis=1)   # (hidden, 2*out)
    head_b = jnp.concatenate([params["bm"], params["bs"]], axis=1)   # (1, 2*out)

    # Batch tiling: one full-array block for small batches; otherwise pad the
    # batch up to a multiple of tile_b so every grid step sees a full tile.
    if B <= tile_b:
        tb = B
        x_p = x
        b_pad = B
    else:
        tb = tile_b
        b_pad = pl.cdiv(B, tb) * tb
        x_p = jnp.pad(x, ((0, b_pad - B), (0, 0))) if b_pad != B else x

    grid = (b_pad // tb,)

    kernel = functools.partial(_clone_kernel, out_size=out_size)

    flops = 2 * b_pad * (in_size * hidden + hidden * hidden + hidden * n_out)
    bytes_accessed = 4 * (b_pad * in_size + in_size * hidden + hidden * hidden
                          + hidden * n_out + 2 * hidden + n_out + b_pad * n_out)
    cost = pl.CostEstimate(flops=flops,
                           transcendentals=2 * b_pad * n_out,
                           bytes_accessed=bytes_accessed)

    def batch_spec(cols):
        # Tiled along batch; whole feature dim in one block.
        return pl.BlockSpec((tb, cols), lambda i: (i, 0))

    def resident(shape):
        # Constant block index -> weights stay resident in VMEM across steps.
        return pl.BlockSpec(shape, lambda i: (0, 0))

    out = pl.pallas_call(
        kernel,
        out_shape=jax.ShapeDtypeStruct((b_pad, n_out), jnp.float32),
        grid=grid,
        in_specs=[
            batch_spec(in_size),
            resident(params["w1"].shape), resident(params["b1"].shape),
            resident(params["w2"].shape), resident(params["b2"].shape),
            resident(head_w.shape), resident(head_b.shape),
        ],
        out_specs=batch_spec(n_out),
        compiler_params=pltpu.CompilerParams(dimension_semantics=("parallel",)),
        cost_estimate=cost,
    )(x_p, params["w1"], params["b1"], params["w2"], params["b2"], head_w, head_b)

    out = out[:B]
    return out[:, :out_size], out[:, out_size:]


def init_params(key, input_size, output_size, hidden_size=64):
    """Deterministic synthetic init (matches nn.Linear shapes, (in, out) layout)."""
    ks = jax.random.split(key, 8)

    def lin(kw, kb, fan_in, fan_out):
        bound = 1.0 / jnp.sqrt(fan_in)
        w = jax.random.uniform(kw, (fan_in, fan_out), jnp.float32, -bound, bound)
        b = jax.random.uniform(kb, (1, fan_out), jnp.float32, -bound, bound)
        return w, b

    w1, b1 = lin(ks[0], ks[1], input_size, hidden_size)
    w2, b2 = lin(ks[2], ks[3], hidden_size, hidden_size)
    wm, bm = lin(ks[4], ks[5], hidden_size, output_size)
    ws, bs = lin(ks[6], ks[7], hidden_size, output_size)
    return {"w1": w1, "b1": b1, "w2": w2, "b2": b2,
            "wm": wm, "bm": bm, "ws": ws, "bs": bs}


def reference_forward(x, p):
    """Plain-JAX reference of the PyTorch forward, for correctness check."""
    h1 = jnp.maximum(x @ p["w1"] + p["b1"], 0.0)
    h2 = jnp.maximum(h1 @ p["w2"] + p["b2"], 0.0)
    mean = jax.nn.sigmoid(h2 @ p["wm"] + p["bm"])
    std = jnp.exp(jnp.clip(h2 @ p["ws"] + p["bs"], -20.0, 2.0))
    return mean, std


if __name__ == "__main__":
    key = jax.random.PRNGKey(0)
    k_x, k_p, k_x2 = jax.random.split(key, 3)

    batch = 8
    input_size = 16
    output_size = 8
    hidden_size = 64

    params = init_params(k_p, input_size, output_size, hidden_size)

    # Small batch: single-block path.
    x = jax.random.normal(k_x, (batch, input_size), dtype=jnp.float32)
    mean, std = clone_model_forward(x, params)
    mean, std = jax.block_until_ready((mean, std))
    mean_ref, std_ref = reference_forward(x, params)
    assert jnp.allclose(mean, mean_ref, atol=1e-5, rtol=1e-5)
    assert jnp.allclose(std, std_ref, atol=1e-5, rtol=1e-5)

    # Larger batch: exercises the batch grid, resident weights, and padding.
    x2 = jax.random.normal(k_x2, (1000, input_size), dtype=jnp.float32)
    mean2, std2 = clone_model_forward(x2, params, tile_b=256)
    mean2, std2 = jax.block_until_ready((mean2, std2))
    mean2_ref, std2_ref = reference_forward(x2, params)
    assert mean2.shape == (1000, output_size) and std2.shape == (1000, output_size)
    assert jnp.allclose(mean2, mean2_ref, atol=1e-5, rtol=1e-5)
    assert jnp.allclose(std2, std2_ref, atol=1e-5, rtol=1e-5)

    print("KERNEL_OK")
</pallas_src>

<mosaic_0001>
module attributes {stable_mosaic.version = 11 : i64} {
  func.func @_clone_kernel(%arg0: i32, %arg1: memref<8x16xf32, #tpu.memory_space<vmem>>, %arg2: memref<16x64xf32, #tpu.memory_space<vmem>>, %arg3: memref<1x64xf32, #tpu.memory_space<vmem>>, %arg4: memref<64x64xf32, #tpu.memory_space<vmem>>, %arg5: memref<1x64xf32, #tpu.memory_space<vmem>>, %arg6: memref<64x16xf32, #tpu.memory_space<vmem>>, %arg7: memref<1x16xf32, #tpu.memory_space<vmem>>, %arg8: memref<8x16xf32, #tpu.memory_space<vmem>>) attributes {dimension_semantics = [#tpu.dimension_semantics<parallel>], iteration_bounds = array<i64: 1>, scalar_prefetch = 0 : i64, scratch_operands = 0 : i64, tpu.core_type = #tpu.core_type<tc>, window_params = [{transform_indices = @transform_0, window_bounds = array<i64: 8, 16>}, {pipeline_mode = #tpu.pipeline_mode<synchronous>, transform_indices = @transform_1, window_bounds = array<i64: 16, 64>}, {pipeline_mode = #tpu.pipeline_mode<synchronous>, transform_indices = @transform_2, window_bounds = array<i64: 1, 64>}, {pipeline_mode = #tpu.pipeline_mode<synchronous>, transform_indices = @transform_3, window_bounds = array<i64: 64, 64>}, {pipeline_mode = #tpu.pipeline_mode<synchronous>, transform_indices = @transform_4, window_bounds = array<i64: 1, 64>}, {pipeline_mode = #tpu.pipeline_mode<synchronous>, transform_indices = @transform_5, window_bounds = array<i64: 64, 16>}, {pipeline_mode = #tpu.pipeline_mode<synchronous>, transform_indices = @transform_6, window_bounds = array<i64: 1, 16>}, {transform_indices = @transform_7, window_bounds = array<i64: 8, 16>}]} {
    %c0 = arith.constant 0 : index
    %c0_0 = arith.constant 0 : index
    %0 = vector.load %arg1[%c0, %c0_0] : memref<8x16xf32, #tpu.memory_space<vmem>>, vector<8x16xf32>
    %c0_1 = arith.constant 0 : index
    %c0_2 = arith.constant 0 : index
    %1 = vector.load %arg2[%c0_1, %c0_2] : memref<16x64xf32, #tpu.memory_space<vmem>>, vector<16x64xf32>
    %cst = arith.constant dense<0.000000e+00> : vector<8x64xf32>
    %2 = tpu.matmul %0, %1, %cst {dimension_numbers = #tpu.dot_dimension_numbers<[1], [0], [0], [1], [0, 0, 1, 1], [], []>} : vector<8x16xf32>, vector<16x64xf32>, vector<8x64xf32> -> vector<8x64xf32>
    %c0_3 = arith.constant 0 : index
    %c0_4 = arith.constant 0 : index
    %3 = vector.load %arg3[%c0_3, %c0_4] : memref<1x64xf32, #tpu.memory_space<vmem>>, vector<1x64xf32>
    %4 = vector.broadcast %3 : vector<1x64xf32> to vector<8x64xf32>
    %5 = arith.addf %2, %4 : vector<8x64xf32>
    %cst_5 = arith.constant 0.000000e+00 : f32
    %6 = vector.broadcast %cst_5 : f32 to vector<8x64xf32>
    %7 = arith.maximumf %5, %6 : vector<8x64xf32>
    %c0_6 = arith.constant 0 : index
    %c0_7 = arith.constant 0 : index
    %8 = vector.load %arg4[%c0_6, %c0_7] : memref<64x64xf32, #tpu.memory_space<vmem>>, vector<64x64xf32>
    %cst_8 = arith.constant dense<0.000000e+00> : vector<8x64xf32>
    %9 = tpu.matmul %7, %8, %cst_8 {dimension_numbers = #tpu.dot_dimension_numbers<[1], [0], [0], [1], [0, 0, 1, 1], [], []>} : vector<8x64xf32>, vector<64x64xf32>, vector<8x64xf32> -> vector<8x64xf32>
    %c0_9 = arith.constant 0 : index
    %c0_10 = arith.constant 0 : index
    %10 = vector.load %arg5[%c0_9, %c0_10] : memref<1x64xf32, #tpu.memory_space<vmem>>, vector<1x64xf32>
    %11 = vector.broadcast %10 : vector<1x64xf32> to vector<8x64xf32>
    %12 = arith.addf %9, %11 : vector<8x64xf32>
    %cst_11 = arith.constant 0.000000e+00 : f32
    %13 = vector.broadcast %cst_11 : f32 to vector<8x64xf32>
    %14 = arith.maximumf %12, %13 : vector<8x64xf32>
    %c0_12 = arith.constant 0 : index
    %c0_13 = arith.constant 0 : index
    %15 = vector.load %arg6[%c0_12, %c0_13] : memref<64x16xf32, #tpu.memory_space<vmem>>, vector<64x16xf32>
    %cst_14 = arith.constant dense<0.000000e+00> : vector<8x16xf32>
    %16 = tpu.matmul %14, %15, %cst_14 {dimension_numbers = #tpu.dot_dimension_numbers<[1], [0], [0], [1], [0, 0, 1, 1], [], []>} : vector<8x64xf32>, vector<64x16xf32>, vector<8x16xf32> -> vector<8x16xf32>
    %c0_15 = arith.constant 0 : index
    %c0_16 = arith.constant 0 : index
    %17 = vector.load %arg7[%c0_15, %c0_16] : memref<1x16xf32, #tpu.memory_space<vmem>>, vector<1x16xf32>
    %18 = vector.broadcast %17 : vector<1x16xf32> to vector<8x16xf32>
    %19 = arith.addf %16, %18 : vector<8x16xf32>
    %20 = arith.negf %19 : vector<8x16xf32>
    %21 = math.exp %20 : vector<8x16xf32>
    %cst_17 = arith.constant 1.000000e+00 : f32
    %22 = vector.broadcast %cst_17 : f32 to vector<8x16xf32>
    %23 = arith.addf %22, %21 : vector<8x16xf32>
    %24 = arith.divf %22, %23 : vector<8x16xf32>
    %cst_18 = arith.constant -2.000000e+01 : f32
    %cst_19 = arith.constant 2.000000e+00 : f32
    %25 = vector.broadcast %cst_18 : f32 to vector<8x16xf32>
    %26 = arith.maximumf %25, %19 : vector<8x16xf32>
    %27 = vector.broadcast %cst_19 : f32 to vector<8x16xf32>
    %28 = arith.minimumf %27, %26 : vector<8x16xf32>
    %29 = math.exp %28 : vector<8x16xf32>
    %30 = tpu.iota {dimensions = array<i32: 1>} : vector<8x16xi32>
    %c8_i32 = arith.constant 8 : i32
    %31 = vector.broadcast %c8_i32 : i32 to vector<8x16xi32>
    %32 = arith.cmpi slt, %30, %31 : vector<8x16xi32>
    %33 = arith.select %32, %24, %29 : vector<8x16xi1>, vector<8x16xf32>
    %c0_20 = arith.constant 0 : index
    %c0_21 = arith.constant 0 : index
    %34 = vector.load %arg8[%c0_20, %c0_21] : memref<8x16xf32, #tpu.memory_space<vmem>>, vector<8x16xf32>
    tpu.vector_store %arg8[%c0_20, %c0_21], %33 {strides = array<i32>} : memref<8x16xf32, #tpu.memory_space<vmem>>, vector<8x16xf32>,
    return
  }
  func.func @transform_0(%arg0: i32) -> (i32, i32) {
    %c0_i32 = arith.constant 0 : i32
    %c0_i32_0 = arith.constant 0 : i32
    return %arg0, %c0_i32 : i32, i32
  }
  func.func @transform_1(%arg0: i32) -> (i32, i32) {
    %c0_i32 = arith.constant 0 : i32
    %c0_i32_0 = arith.constant 0 : i32
    %c0_i32_1 = arith.constant 0 : i32
    return %c0_i32, %c0_i32_0 : i32, i32
  }
  func.func @transform_2(%arg0: i32) -> (i32, i32) {
    %c0_i32 = arith.constant 0 : i32
    %c0_i32_0 = arith.constant 0 : i32
    %c0_i32_1 = arith.constant 0 : i32
    return %c0_i32, %c0_i32_0 : i32, i32
  }
  func.func @transform_3(%arg0: i32) -> (i32, i32) {
    %c0_i32 = arith.constant 0 : i32
    %c0_i32_0 = arith.constant 0 : i32
    %c0_i32_1 = arith.constant 0 : i32
    return %c0_i32, %c0_i32_0 : i32, i32
  }
  func.func @transform_4(%arg0: i32) -> (i32, i32) {
    %c0_i32 = arith.constant 0 : i32
    %c0_i32_0 = arith.constant 0 : i32
    %c0_i32_1 = arith.constant 0 : i32
    return %c0_i32, %c0_i32_0 : i32, i32
  }
  func.func @transform_5(%arg0: i32) -> (i32, i32) {
    %c0_i32 = arith.constant 0 : i32
    %c0_i32_0 = arith.constant 0 : i32
    %c0_i32_1 = arith.constant 0 : i32
    return %c0_i32, %c0_i32_0 : i32, i32
  }
  func.func @transform_6(%arg0: i32) -> (i32, i32) {
    %c0_i32 = arith.constant 0 : i32
    %c0_i32_0 = arith.constant 0 : i32
    %c0_i32_1 = arith.constant 0 : i32
    return %c0_i32, %c0_i32_0 : i32, i32
  }
  func.func @transform_7(%arg0: i32) -> (i32, i32) {
    %c0_i32 = arith.constant 0 : i32
    %c0_i32_0 = arith.constant 0 : i32
    return %arg0, %c0_i32 : i32, i32
  }
}

</mosaic_0001>

<bundles_post_ra>
// kernel: tpu_custom_call.1
= control target key start
LH: loop header
LB: loop body
LE: loop exit
PB: predicated region body
PF: predicated region fallthrough
CT: control target
= control target key end

     0   :  { %12 = vsyncpa [#allocation3], 0  ;;  %s370_s0 = inlined_call_operand.hbm [shape: f32[8,16], index: 0, kind: input, shape index: {}]   ;;  %s371_s1 = inlined_call_operand.vmem [shape: f32[16,64], index: 1, kind: input, shape index: {}]   ;;  %s372_s2 = inlined_call_operand.vmem [shape: f32[1,64], index: 2, kind: input, shape index: {}]   ;;  %s373_s3 = inlined_call_operand.vmem [shape: f32[64,64], index: 3, kind: input, shape index: {}]   ;;  %s374_s4 = inlined_call_operand.vmem [shape: f32[1,64], index: 4, kind: input, shape index: {}]   ;;  %s375_s5 = inlined_call_operand.vmem [shape: f32[64,16], index: 5, kind: input, shape index: {}]   ;;  %s376_s6 = inlined_call_operand.vmem [shape: f32[1,16], index: 6, kind: input, shape index: {}]   ;;  %s377_s7 = inlined_call_operand.hbm [shape: f32[8,16], index: 7, kind: output, shape index: {}]  }
   0x1   :  { %13 = vsyncpa [#allocation4], 0  ;;  %s19_s26 = sshll.u32 %s370_s0, 4  ;;  %s257_s27 = smov [#allocation2]   ;;  %s20_s26 = int_to_ptr.hbm [resolvable:$true] %s19_s26 }
   0x2   :  { %s21_s28 = sshll.u32 %s257_s27, 4  ;;  %s22_s28 = int_to_ptr.vmem [resolvable:$true] %s21_s28 }
   0x3   :  { %24 = dma.hbm_to_vmem [thread:$0]  %s20_s26, 128, %s22_s28, [#allocation3]  }
   0x4   :  { %253 = dma.done.wait [#allocation3], 128  }
   0x5   :  { %254 = vsyncadd [#allocation3], 4294967168  ;;  %v43_v0 = vld [vmem:[%s371_s1 + $0x8] sm:$0xff]  ;;  %v42_v1 = vld [vmem:[%s371_s1] sm:$0xff]  ;;  %vm48_vm0 = vcmask 130048   ;;  %vm85_vm1 = vcmask 523264   ;;  %v168_v37 = vlaneseq }
   0x6   :  { %66 = vmatpush.msra.mxu0 %v43_v0  ;;  %v41_v2 = vld [vmem:[#allocation2] sm:$0xff]  ;;  %v80_v3 = vld [vmem:[%s373_s3 + $0x38] sm:$0xff]  ;;  %v79_v4 = vld [vmem:[%s373_s3 + $0x30] sm:$0xff]  ;;  %s180_s20 = sshll.u32 %s377_s7, 4  ;;  %s181_s20 = int_to_ptr.hbm [resolvable:$true] %s180_s20 }
   0x7   :  { %97 = vmatpush.msra.mxu1 %v80_v3  ;;  %v78_v5 = vld [vmem:[%s373_s3 + $0x28] sm:$0xff]  ;;  %v77_v6 = vld [vmem:[%s373_s3 + $0x20] sm:$0xff]  ;;  %v76_v7 = vld [vmem:[%s373_s3 + $0x18] sm:$0xff]  ;;  %v169_v41 = vand.u32 127, %v168_v37 }
   0x8   :  { %67 = vmatpush.msra.mxu0 %v42_v1  ;;  %v75_v8 = vld [vmem:[%s373_s3 + $0x10] sm:$0xff]  ;;  %v74_v9 = vld [vmem:[%s373_s3 + $0x8] sm:$0xff]  ;;  %v73_v10 = vld [vmem:[%s373_s3] sm:$0xff] }
   0x9   :  { %190 = vmatmul.msk.f32.vlgmr.msra.gmra.mxu0 %vm48_vm0, %v41_v2  ;;  %98 = vmatpush.msra.mxu1 %v79_v4  ;;  %v117_v11 = vld [vmem:[%s375_s5 + $0x38] sm:$0xff]  ;;  %v116_v12 = vld [vmem:[%s375_s5 + $0x30] sm:$0xff]  ;;  %v115_v13 = vld [vmem:[%s375_s5 + $0x28] sm:$0xff]  ;;  %vm170_vm5 = vcmp.lt.s32.totalorder %v169_v41, 8 }
   0xa   :  { %133 = vmatpush.msra.mxu2 %v117_v11  ;;  %v114_v14 = vld [vmem:[%s375_s5 + $0x20] sm:$0xff]  ;;  %v113_v15 = vld [vmem:[%s375_s5 + $0x18] sm:$0xff]  ;;  %v112_v20 = vld [vmem:[%s375_s5 + $0x10] sm:$0xff] }
   0xb   :  { %99 = vmatpush.msra.mxu1 %v78_v5  ;;  %v196_v16 = vld [vmem:[%s372_s2] ss:$0 sm:$0xff]  ;;  %v111_v21 = vld [vmem:[%s375_s5 + $0x8] sm:$0xff] }
   0xc   :  { %134 = vmatpush.msra.mxu2 %v116_v12  ;;  %v110_v22 = vld [vmem:[%s375_s5] sm:$0xff] }
   0xd   :  { %100 = vmatpush.msra.mxu1 %v77_v6  ;;  %v197_v23 = vld [vmem:[%s374_s4] ss:$0 sm:$0xff]  ;;  %s258_s4 = smov [#allocation5]  }
   0xe   :  { %135 = vmatpush.msra.mxu2 %v115_v13  ;;  %v198_v27 = vld [vmem:[%s376_s6] ss:$0 sm:$0xff]  ;;  %s178_s5 = sshll.u32 %s258_s4, 4  ;;  %s179_s5 = int_to_ptr.vmem [resolvable:$true] %s178_s5 }
   0xf   :  { %101 = vmatpush.msra.mxu1 %v76_v7 }
  0x10   :  { %136 = vmatpush.msra.mxu2 %v114_v14 }
  0x11   :  { %102 = vmatpush.msra.mxu1 %v75_v8 }
  0x12   :  { %137 = vmatpush.msra.mxu2 %v113_v15 }
  0x13   :  { %103 = vmatpush.msra.mxu1 %v74_v9 }
  0x14   :  { %138 = vmatpush.msra.mxu2 %v112_v20 }
  0x15   :  { %104 = vmatpush.msra.mxu1 %v73_v10 }
  0x16   :  { %139 = vmatpush.msra.mxu2 %v111_v21 }
  0x18   :  { %140 = vmatpush.msra.mxu2 %v110_v22 }
  0x86   :  { %v69_v17 = vpop.f32.mrf.mxu0 }
  0x87   :  { %v70_v18 = vadd.f32 %v196_v16, %v69_v17 }
  0x89   :  { %v72_v19 = vmax.f32 %v70_v18, 0.0 }
  0x8b   :  { %191 = vmatmul.msk.f32.vlgmr.msra.gmra.mxu1 %vm85_vm1, %v72_v19 }
 0x108   :  { %v106_v24 = vpop.f32.mrf.mxu1 }
 0x109   :  { %v107_v25 = vadd.f32 %v197_v23, %v106_v24 }
 0x10b   :  { %v109_v26 = vmax.f32 %v107_v25, 0.0 }
 0x10d   :  { %192 = vmatmul.msk.f32.vlgmr.msra.gmra.mxu2 %vm85_vm1, %v109_v26 }
 0x190   :  { %v142_v28 = vpop.f32.mrf.mxu2 }
 0x191   :  { %v143_v29 = vadd.f32 %v198_v27, %v142_v28 }
 0x193   :  { %v193_v30 = vmul.f32 -1.442695, %v143_v29  ;;  %v164_v33 = vmax.f32 %v143_v29, -20.0 }
 0x195   :  { %199 = vpow2.f32 %v193_v30  ;;  %v165_v34 = vmin.f32 %v164_v33, 2.0 }
 0x197   :  { %v166_v36 = vmul.f32 1.442695, %v165_v34 }
 0x19b   :  { %v200_v31 = vpop.eup %199 }
 0x19c   :  { %v148_v32 = vadd.f32 1.0, %v200_v31 }
 0x19e   :  { %201 = vrcp.f32 %v148_v32  ;;  %v160_v40 = vand.u32 2147483648, %v148_v32  ;;  %v158_v43 = vand.u32 2147483647, %v148_v32  ;;  %vm154_vm3 = vweird.f32 %v148_v32 }
 0x19f   :  { %203 = vpow2.f32 %v166_v36 }
 0x1a0   :  { %v161_v45 = vor.u32 1.1754944e-38, %v160_v40  ;;  %vm159_vm6 = vcmp.eq.f32.partialorder %v158_v43, 8.507059e+37 }
 0x1a4   :  { %v202_v35 = vpop.eup %201 }
 0x1a5   :  { %v150_v38 = vmul.f32 %v202_v35, %v148_v32  ;;  %vm155_vm2 = vweird.f32 %v202_v35  ;;  %v204_v47 = vpop.eup %203 }
 0x1a6   :  { %vm156_vm4 = vmor %vm154_vm3, %vm155_vm2 }
 0x1a7   :  { %v151_v39 = vsub.f32 1.0, %v150_v38 }
 0x1a9   :  { %v152_v42 = vmul.f32 %v202_v35, %v151_v39 }
 0x1ab   :  { %v153_v44 = vadd.f32 %v202_v35, %v152_v42 }
 0x1ad   :  { %v157_v46 = vsel %vm156_vm4, %v202_v35, %v153_v44 }
 0x1ae   :  { %v162_v48 = vsel %vm159_vm6, %v161_v45, %v157_v46 }
 0x1af   :  { %v171_v49 = vsel %vm170_vm5, %v162_v48, %v204_v47 }
 0x1b0   :  { %172 = vst.msk [vmem:[#allocation5] sm:$0xff] %vm48_vm0, %v171_v49 }
 0x1b1   :  { %183 = dma.vmem_to_hbm [thread:$0]  %s179_s5, 128, %s181_s20, [#allocation4]  }
 0x1b2   :  { %255 = dma.done.wait [#allocation4], 128  }
 0x1b3   :  { %256 = vsyncadd [#allocation4], 4294967168 }
 0x1b4   :  { %188 = vsyncpa [#allocation3], 1 }
 0x1b5   :  { %189 = vsyncpa [#allocation4], 1 }

</bundles_post_ra>
